<compile_context>
chip_gen: v7x
topology: tpu7x:2x2x1
jax: 0.10.0
libtpu: 0.0.40
codegen_flags: <defaults>
</compile_context>

<pallas_src>
import functools

import jax
import jax.numpy as jnp
from jax import lax
from jax.experimental import pallas as pl
from jax.experimental.pallas import tpu as pltpu


def _dwsep_kernel(x_ref, dww_ref, wblk_ref, bias_ref, o_ref, xpad_ref, *,
                  kh_size, kw_size, h_in, w_in, c_in, c_out,
                  h_out, w_out, padding):
    """One batch element per grid step.

    x_ref:    (1, H, W*Cin)          unpadded input image, fused (W,Cin) lanes
    dww_ref:  (KH*KW, Ho, Wo*Cin)    depthwise taps, pre-broadcast over rows
    wblk_ref: (Wo*Cin, Wo*Cout)      block-diagonal pointwise weight kron(I, pw)
    bias_ref: (Ho, Wo*Cout)          fused bias (pw_b + dw_b @ pw), pre-broadcast
    o_ref:    (1, Ho, Wo*Cout)       lane-dense output
    xpad_ref: (Hp, Wp*Cin) VMEM      zero-padded image (rebuilt every step)
    """
    hp = h_in + 2 * padding
    wp = w_in + 2 * padding

    # --- build the spatially zero-padded image in VMEM: halo-only zeroing ----
    if padding > 0:
        zrow = jnp.zeros((padding, wp * c_in), jnp.float32)
        xpad_ref[pl.ds(0, padding), :] = zrow                      # top rows
        xpad_ref[pl.ds(padding + h_in, padding), :] = zrow         # bottom rows
        zcol = jnp.zeros((hp, padding * c_in), jnp.float32)
        xpad_ref[:, pl.ds(0, padding * c_in)] = zcol               # left lanes
        xpad_ref[:, pl.ds((padding + w_in) * c_in, padding * c_in)] = zcol
    xpad_ref[pl.ds(padding, h_in), pl.ds(padding * c_in, w_in * c_in)] = (
        x_ref[0].astype(jnp.float32))

    # --- depthwise conv on the VPU, accumulator kept in vregs ----------------
    # stride == 1: tap (kh, kw) is the contiguous lane run
    # [kw*Cin, (kw+Wo)*Cin) of rows [kh, kh+Ho) of the padded image.
    acc = None
    for kh in range(kh_size):
        for kw in range(kw_size):
            win = xpad_ref[pl.ds(kh, h_out), pl.ds(kw * c_in, w_out * c_in)]
            term = win * dww_ref[kh * kw_size + kw]     # (Ho, Wo*Cin), no bcast
            acc = term if acc is None else acc + term

    # --- pointwise 1x1 conv: one lane-dense matmul on the MXU ----------------
    # (Ho, Wo*Cin) @ (Wo*Cin, Wo*Cout); the store below is an unmasked
    # full-lane vst when Wo*Cout is a multiple of 128.
    out = jnp.dot(acc, wblk_ref[...], preferred_element_type=jnp.float32)
    out = out + bias_ref[...]
    o_ref[0] = out.astype(o_ref.dtype)


def depthwise_separable_conv(x_nchw, dw_weight, dw_bias, pw_weight, pw_bias,
                             *, stride=1, padding=0):
    """Matches PyTorch DepthwiseSeparableConv.forward.

    x_nchw:    (N, Cin, H, W)
    dw_weight: (Cin, 1, KH, KW)   (groups == Cin)
    dw_bias:   (Cin,)
    pw_weight: (Cout, Cin, 1, 1)
    pw_bias:   (Cout,)
    returns:   (N, Cout, Ho, Wo)
    """
    n, c_in, h, w = x_nchw.shape
    kh_size, kw_size = int(dw_weight.shape[2]), int(dw_weight.shape[3])
    c_out = int(pw_weight.shape[0])

    if stride != 1:
        # TODO(synk): direct strided fused-lane taps; this over-computes by stride^2.
        full = depthwise_separable_conv(x_nchw, dw_weight, dw_bias,
                                        pw_weight, pw_bias,
                                        stride=1, padding=padding)
        return full[:, :, ::stride, ::stride]

    h_out = h + 2 * padding - kh_size + 1
    w_out = w + 2 * padding - kw_size + 1
    hp = h + 2 * padding
    wp = w + 2 * padding

    # ---- plain-JAX glue: one layout pass NCHW -> fused (N, H, W*Cin) --------
    x_fused = jnp.transpose(x_nchw, (0, 2, 3, 1)).reshape(n, h, w * c_in)

    # Depthwise taps tiled along the fused lane axis and pre-broadcast over the
    # output-row (sublane) axis so the kernel's tap loop is pure vld:
    #   dww[kh*KW+kw, ho, wo*Cin + c] = dw_weight[c, 0, kh, kw]
    dw_taps = jnp.transpose(dw_weight[:, 0, :, :], (1, 2, 0)).reshape(
        kh_size * kw_size, c_in)
    dww_tiled = jnp.tile(dw_taps, (1, w_out)).astype(jnp.float32)
    dww_bcast = jnp.broadcast_to(
        dww_tiled[:, None, :], (kh_size * kw_size, h_out, w_out * c_in))

    # Pointwise weights as a block-diagonal matrix acting on the fused lanes.
    pw_mat = jnp.transpose(pw_weight[:, :, 0, 0], (1, 0)).astype(jnp.float32)
    wblk = jnp.kron(jnp.eye(w_out, dtype=jnp.float32), pw_mat)

    # Depthwise bias folded through the pointwise conv, tiled to fused lanes
    # and pre-broadcast over output rows.
    bias = pw_bias.astype(jnp.float32) + dw_bias.astype(jnp.float32) @ pw_mat
    bias_fused = jnp.tile(bias, w_out)                       # (Wo*Cout,)
    bias_bcast = jnp.broadcast_to(bias_fused[None, :], (h_out, w_out * c_out))

    kernel = functools.partial(
        _dwsep_kernel,
        kh_size=kh_size, kw_size=kw_size,
        h_in=h, w_in=w, c_in=c_in, c_out=c_out,
        h_out=h_out, w_out=w_out, padding=padding)

    # Grid = (N,): one full image per step (all inputs besides x are constant
    # across the grid, so extra steps buy nothing); batch axis is "parallel"
    # for megacore / v7x dual-TC.  Per-step VMEM here is well under 1 MiB.
    out_fused = pl.pallas_call(
        kernel,
        out_shape=jax.ShapeDtypeStruct((n, h_out, w_out * c_out), jnp.float32),
        grid_spec=pltpu.PrefetchScalarGridSpec(
            num_scalar_prefetch=0,
            grid=(n,),
            in_specs=[
                pl.BlockSpec((1, h, w * c_in), lambda b: (b, 0, 0)),
                pl.BlockSpec((kh_size * kw_size, h_out, w_out * c_in),
                             lambda b: (0, 0, 0)),
                pl.BlockSpec((w_out * c_in, w_out * c_out), lambda b: (0, 0)),
                pl.BlockSpec((h_out, w_out * c_out), lambda b: (0, 0)),
            ],
            out_specs=pl.BlockSpec((1, h_out, w_out * c_out),
                                   lambda b: (b, 0, 0)),
            scratch_shapes=[
                pltpu.VMEM((hp, wp * c_in), jnp.float32),
            ],
        ),
        compiler_params=pltpu.CompilerParams(
            dimension_semantics=("parallel",),
            vmem_limit_bytes=32 * 1024 * 1024),
    )(x_fused, dww_bcast, wblk, bias_bcast)

    out = out_fused.reshape(n, h_out, w_out, c_out)
    return jnp.transpose(out, (0, 3, 1, 2))                  # (N,Cout,Ho,Wo)


def _reference(x, dw_w, dw_b, pw_w, pw_b, *, stride, padding):
    """Plain-JAX reference (lax conv) for correctness check."""
    c_in = x.shape[1]
    y = lax.conv_general_dilated(
        x, dw_w, window_strides=(stride, stride),
        padding=((padding, padding), (padding, padding)),
        dimension_numbers=("NCHW", "OIHW", "NCHW"),
        feature_group_count=c_in)
    y = y + dw_b.reshape(1, -1, 1, 1)
    z = lax.conv_general_dilated(
        y, pw_w, window_strides=(1, 1), padding=((0, 0), (0, 0)),
        dimension_numbers=("NCHW", "OIHW", "NCHW"))
    return z + pw_b.reshape(1, -1, 1, 1)


if __name__ == "__main__":
    # Module config: DepthwiseSeparableConv(in=4, out=8, kernel_size=3, padding=1)
    N, C_IN, C_OUT, H, W = 2, 4, 8, 16, 16
    KS, PAD, STRIDE = 3, 1, 1

    key = jax.random.PRNGKey(0)
    k0, k1, k2, k3, k4 = jax.random.split(key, 5)

    x = jax.random.normal(k0, (N, C_IN, H, W), jnp.float32)
    dw_weight = jax.random.normal(k1, (C_IN, 1, KS, KS), jnp.float32) * 0.1
    dw_bias = jax.random.normal(k2, (C_IN,), jnp.float32) * 0.1
    pw_weight = jax.random.normal(k3, (C_OUT, C_IN, 1, 1), jnp.float32) * 0.1
    pw_bias = jax.random.normal(k4, (C_OUT,), jnp.float32) * 0.1

    out = depthwise_separable_conv(x, dw_weight, dw_bias, pw_weight, pw_bias,
                                   stride=STRIDE, padding=PAD)
    out = jax.block_until_ready(out)

    ref = _reference(x, dw_weight, dw_bias, pw_weight, pw_bias,
                     stride=STRIDE, padding=PAD)
    assert out.shape == (N, C_OUT, H, W), out.shape
    assert jnp.allclose(out, ref, atol=1e-4, rtol=1e-4), "mismatch vs reference"

    print("KERNEL_OK")
</pallas_src>

<mosaic_0001>
module attributes {stable_mosaic.version = 11 : i64} {
  func.func @_dwsep_kernel(%arg0: i32, %arg1: memref<1x16x64xf32, #tpu.memory_space<vmem>>, %arg2: memref<9x16x64xf32, #tpu.memory_space<vmem>>, %arg3: memref<64x128xf32, #tpu.memory_space<vmem>>, %arg4: memref<16x128xf32, #tpu.memory_space<vmem>>, %arg5: memref<1x16x128xf32, #tpu.memory_space<vmem>>, %arg6: memref<18x72xf32, #tpu.memory_space<vmem>>) attributes {dimension_semantics = [#tpu.dimension_semantics<parallel>], iteration_bounds = array<i64: 2>, scalar_prefetch = 0 : i64, scratch_operands = 1 : i64, tpu.core_type = #tpu.core_type<tc>, window_params = [{transform_indices = @transform_0, window_bounds = array<i64: 1, 16, 64>}, {pipeline_mode = #tpu.pipeline_mode<synchronous>, transform_indices = @transform_1, window_bounds = array<i64: 9, 16, 64>}, {pipeline_mode = #tpu.pipeline_mode<synchronous>, transform_indices = @transform_2, window_bounds = array<i64: 64, 128>}, {pipeline_mode = #tpu.pipeline_mode<synchronous>, transform_indices = @transform_3, window_bounds = array<i64: 16, 128>}, {transform_indices = @transform_4, window_bounds = array<i64: 1, 16, 128>}]} {
    %cst = arith.constant 0.000000e+00 : f32
    %0 = vector.broadcast %cst : f32 to vector<1x72xf32>
    %c0 = arith.constant 0 : index
    %c0_0 = arith.constant 0 : index
    %1 = vector.load %arg6[%c0, %c0_0] : memref<18x72xf32, #tpu.memory_space<vmem>>, vector<1x72xf32>
    tpu.vector_store %arg6[%c0, %c0_0], %0 {strides = array<i32>} : memref<18x72xf32, #tpu.memory_space<vmem>>, vector<1x72xf32>,
    %c17 = arith.constant 17 : index
    %c0_1 = arith.constant 0 : index
    %2 = vector.load %arg6[%c17, %c0_1] : memref<18x72xf32, #tpu.memory_space<vmem>>, vector<1x72xf32>
    tpu.vector_store %arg6[%c17, %c0_1], %0 {strides = array<i32>} : memref<18x72xf32, #tpu.memory_space<vmem>>, vector<1x72xf32>,
    %cst_2 = arith.constant 0.000000e+00 : f32
    %3 = vector.broadcast %cst_2 : f32 to vector<18x4xf32>
    %c0_3 = arith.constant 0 : index
    %c0_4 = arith.constant 0 : index
    %4 = vector.load %arg6[%c0_3, %c0_4] : memref<18x72xf32, #tpu.memory_space<vmem>>, vector<18x4xf32>
    tpu.vector_store %arg6[%c0_3, %c0_4], %3 {strides = array<i32>} : memref<18x72xf32, #tpu.memory_space<vmem>>, vector<18x4xf32>,
    %c0_5 = arith.constant 0 : index
    %c68 = arith.constant 68 : index
    %5 = vector.load %arg6[%c0_5, %c68] : memref<18x72xf32, #tpu.memory_space<vmem>>, vector<18x4xf32>
    tpu.vector_store %arg6[%c0_5, %c68], %3 {strides = array<i32>} : memref<18x72xf32, #tpu.memory_space<vmem>>, vector<18x4xf32>,
    %c0_6 = arith.constant 0 : index
    %c0_7 = arith.constant 0 : index
    %c0_8 = arith.constant 0 : index
    %6 = vector.load %arg1[%c0_6, %c0_7, %c0_8] : memref<1x16x64xf32, #tpu.memory_space<vmem>>, vector<1x16x64xf32>
    %7 = vector.shape_cast %6 : vector<1x16x64xf32> to vector<16x64xf32>
    %c1 = arith.constant 1 : index
    %c4 = arith.constant 4 : index
    %8 = vector.load %arg6[%c1, %c4] : memref<18x72xf32, #tpu.memory_space<vmem>>, vector<16x64xf32>
    tpu.vector_store %arg6[%c1, %c4], %7 {strides = array<i32>} : memref<18x72xf32, #tpu.memory_space<vmem>>, vector<16x64xf32>,
    %c0_9 = arith.constant 0 : index
    %c0_10 = arith.constant 0 : index
    %9 = vector.load %arg6[%c0_9, %c0_10] : memref<18x72xf32, #tpu.memory_space<vmem>>, vector<16x64xf32>
    %c0_11 = arith.constant 0 : index
    %c0_12 = arith.constant 0 : index
    %c0_13 = arith.constant 0 : index
    %10 = vector.load %arg2[%c0_11, %c0_12, %c0_13] : memref<9x16x64xf32, #tpu.memory_space<vmem>>, vector<1x16x64xf32>
    %11 = vector.shape_cast %10 : vector<1x16x64xf32> to vector<16x64xf32>
    %12 = arith.mulf %9, %11 : vector<16x64xf32>
    %c0_14 = arith.constant 0 : index
    %c4_15 = arith.constant 4 : index
    %13 = vector.load %arg6[%c0_14, %c4_15] : memref<18x72xf32, #tpu.memory_space<vmem>>, vector<16x64xf32>
    %c1_16 = arith.constant 1 : index
    %c0_17 = arith.constant 0 : index
    %c0_18 = arith.constant 0 : index
    %14 = vector.load %arg2[%c1_16, %c0_17, %c0_18] : memref<9x16x64xf32, #tpu.memory_space<vmem>>, vector<1x16x64xf32>
    %15 = vector.shape_cast %14 : vector<1x16x64xf32> to vector<16x64xf32>
    %16 = arith.mulf %13, %15 : vector<16x64xf32>
    %17 = arith.addf %12, %16 : vector<16x64xf32>
    %c0_19 = arith.constant 0 : index
    %c8 = arith.constant 8 : index
    %18 = vector.load %arg6[%c0_19, %c8] : memref<18x72xf32, #tpu.memory_space<vmem>>, vector<16x64xf32>
    %c2 = arith.constant 2 : index
    %c0_20 = arith.constant 0 : index
    %c0_21 = arith.constant 0 : index
    %19 = vector.load %arg2[%c2, %c0_20, %c0_21] : memref<9x16x64xf32, #tpu.memory_space<vmem>>, vector<1x16x64xf32>
    %20 = vector.shape_cast %19 : vector<1x16x64xf32> to vector<16x64xf32>
    %21 = arith.mulf %18, %20 : vector<16x64xf32>
    %22 = arith.addf %17, %21 : vector<16x64xf32>
    %c1_22 = arith.constant 1 : index
    %c0_23 = arith.constant 0 : index
    %23 = vector.load %arg6[%c1_22, %c0_23] : memref<18x72xf32, #tpu.memory_space<vmem>>, vector<16x64xf32>
    %c3 = arith.constant 3 : index
    %c0_24 = arith.constant 0 : index
    %c0_25 = arith.constant 0 : index
    %24 = vector.load %arg2[%c3, %c0_24, %c0_25] : memref<9x16x64xf32, #tpu.memory_space<vmem>>, vector<1x16x64xf32>
    %25 = vector.shape_cast %24 : vector<1x16x64xf32> to vector<16x64xf32>
    %26 = arith.mulf %23, %25 : vector<16x64xf32>
    %27 = arith.addf %22, %26 : vector<16x64xf32>
    %c1_26 = arith.constant 1 : index
    %c4_27 = arith.constant 4 : index
    %28 = vector.load %arg6[%c1_26, %c4_27] : memref<18x72xf32, #tpu.memory_space<vmem>>, vector<16x64xf32>
    %c4_28 = arith.constant 4 : index
    %c0_29 = arith.constant 0 : index
    %c0_30 = arith.constant 0 : index
    %29 = vector.load %arg2[%c4_28, %c0_29, %c0_30] : memref<9x16x64xf32, #tpu.memory_space<vmem>>, vector<1x16x64xf32>
    %30 = vector.shape_cast %29 : vector<1x16x64xf32> to vector<16x64xf32>
    %31 = arith.mulf %28, %30 : vector<16x64xf32>
    %32 = arith.addf %27, %31 : vector<16x64xf32>
    %c1_31 = arith.constant 1 : index
    %c8_32 = arith.constant 8 : index
    %33 = vector.load %arg6[%c1_31, %c8_32] : memref<18x72xf32, #tpu.memory_space<vmem>>, vector<16x64xf32>
    %c5 = arith.constant 5 : index
    %c0_33 = arith.constant 0 : index
    %c0_34 = arith.constant 0 : index
    %34 = vector.load %arg2[%c5, %c0_33, %c0_34] : memref<9x16x64xf32, #tpu.memory_space<vmem>>, vector<1x16x64xf32>
    %35 = vector.shape_cast %34 : vector<1x16x64xf32> to vector<16x64xf32>
    %36 = arith.mulf %33, %35 : vector<16x64xf32>
    %37 = arith.addf %32, %36 : vector<16x64xf32>
    %c2_35 = arith.constant 2 : index
    %c0_36 = arith.constant 0 : index
    %38 = vector.load %arg6[%c2_35, %c0_36] : memref<18x72xf32, #tpu.memory_space<vmem>>, vector<16x64xf32>
    %c6 = arith.constant 6 : index
    %c0_37 = arith.constant 0 : index
    %c0_38 = arith.constant 0 : index
    %39 = vector.load %arg2[%c6, %c0_37, %c0_38] : memref<9x16x64xf32, #tpu.memory_space<vmem>>, vector<1x16x64xf32>
    %40 = vector.shape_cast %39 : vector<1x16x64xf32> to vector<16x64xf32>
    %41 = arith.mulf %38, %40 : vector<16x64xf32>
    %42 = arith.addf %37, %41 : vector<16x64xf32>
    %c2_39 = arith.constant 2 : index
    %c4_40 = arith.constant 4 : index
    %43 = vector.load %arg6[%c2_39, %c4_40] : memref<18x72xf32, #tpu.memory_space<vmem>>, vector<16x64xf32>
    %c7 = arith.constant 7 : index
    %c0_41 = arith.constant 0 : index
    %c0_42 = arith.constant 0 : index
    %44 = vector.load %arg2[%c7, %c0_41, %c0_42] : memref<9x16x64xf32, #tpu.memory_space<vmem>>, vector<1x16x64xf32>
    %45 = vector.shape_cast %44 : vector<1x16x64xf32> to vector<16x64xf32>
    %46 = arith.mulf %43, %45 : vector<16x64xf32>
    %47 = arith.addf %42, %46 : vector<16x64xf32>
    %c2_43 = arith.constant 2 : index
    %c8_44 = arith.constant 8 : index
    %48 = vector.load %arg6[%c2_43, %c8_44] : memref<18x72xf32, #tpu.memory_space<vmem>>, vector<16x64xf32>
    %c8_45 = arith.constant 8 : index
    %c0_46 = arith.constant 0 : index
    %c0_47 = arith.constant 0 : index
    %49 = vector.load %arg2[%c8_45, %c0_46, %c0_47] : memref<9x16x64xf32, #tpu.memory_space<vmem>>, vector<1x16x64xf32>
    %50 = vector.shape_cast %49 : vector<1x16x64xf32> to vector<16x64xf32>
    %51 = arith.mulf %48, %50 : vector<16x64xf32>
    %52 = arith.addf %47, %51 : vector<16x64xf32>
    %c0_48 = arith.constant 0 : index
    %c0_49 = arith.constant 0 : index
    %53 = vector.load %arg3[%c0_48, %c0_49] : memref<64x128xf32, #tpu.memory_space<vmem>>, vector<64x128xf32>
    %cst_50 = arith.constant dense<0.000000e+00> : vector<16x128xf32>
    %54 = tpu.matmul %52, %53, %cst_50 {dimension_numbers = #tpu.dot_dimension_numbers<[1], [0], [0], [1], [0, 0, 1, 1], [], []>} : vector<16x64xf32>, vector<64x128xf32>, vector<16x128xf32> -> vector<16x128xf32>
    %c0_51 = arith.constant 0 : index
    %c0_52 = arith.constant 0 : index
    %55 = vector.load %arg4[%c0_51, %c0_52] : memref<16x128xf32, #tpu.memory_space<vmem>>, vector<16x128xf32>
    %56 = arith.addf %54, %55 : vector<16x128xf32>
    %c0_53 = arith.constant 0 : index
    %c0_54 = arith.constant 0 : index
    %c0_55 = arith.constant 0 : index
    %57 = vector.load %arg5[%c0_53, %c0_54, %c0_55] : memref<1x16x128xf32, #tpu.memory_space<vmem>>, vector<1x16x128xf32>
    %58 = vector.shape_cast %57 : vector<1x16x128xf32> to vector<16x128xf32>
    %59 = vector.shape_cast %56 : vector<16x128xf32> to vector<1x16x128xf32>
    tpu.vector_store %arg5[%c0_53, %c0_54, %c0_55], %59 {strides = array<i32>} : memref<1x16x128xf32, #tpu.memory_space<vmem>>, vector<1x16x128xf32>,
    return
  }
  func.func @transform_0(%arg0: i32) -> (i32, i32, i32) {
    %c0_i32 = arith.constant 0 : i32
    %c0_i32_0 = arith.constant 0 : i32
    %c0_i32_1 = arith.constant 0 : i32
    return %arg0, %c0_i32, %c0_i32_0 : i32, i32, i32
  }
  func.func @transform_1(%arg0: i32) -> (i32, i32, i32) {
    %c0_i32 = arith.constant 0 : i32
    %c0_i32_0 = arith.constant 0 : i32
    %c0_i32_1 = arith.constant 0 : i32
    %c0_i32_2 = arith.constant 0 : i32
    return %c0_i32, %c0_i32_0, %c0_i32_1 : i32, i32, i32
  }
  func.func @transform_2(%arg0: i32) -> (i32, i32) {
    %c0_i32 = arith.constant 0 : i32
    %c0_i32_0 = arith.constant 0 : i32
    %c0_i32_1 = arith.constant 0 : i32
    return %c0_i32, %c0_i32_0 : i32, i32
  }
  func.func @transform_3(%arg0: i32) -> (i32, i32) {
    %c0_i32 = arith.constant 0 : i32
    %c0_i32_0 = arith.constant 0 : i32
    %c0_i32_1 = arith.constant 0 : i32
    return %c0_i32, %c0_i32_0 : i32, i32
  }
  func.func @transform_4(%arg0: i32) -> (i32, i32, i32) {
    %c0_i32 = arith.constant 0 : i32
    %c0_i32_0 = arith.constant 0 : i32
    %c0_i32_1 = arith.constant 0 : i32
    return %arg0, %c0_i32, %c0_i32_0 : i32, i32, i32
  }
}

</mosaic_0001>

<bundles_post_ra>
// kernel: tpu_custom_call.1
= control target key start
LH: loop header
LB: loop body
LE: loop exit
PB: predicated region body
PF: predicated region fallthrough
CT: control target
= control target key end

     0   :  { %9 = vsyncpa [#allocation4], 0  ;;  %s1334_s0 = inlined_call_operand.hbm [shape: f32[2,16,64], index: 0, kind: input, shape index: {}]   ;;  %s1335_s1 = inlined_call_operand.hbm [shape: f32[9,16,64], index: 1, kind: input, shape index: {}]   ;;  %s1336_s2 = inlined_call_operand.hbm [shape: f32[64,128], index: 2, kind: input, shape index: {}]   ;;  %s1337_s3 = inlined_call_operand.hbm [shape: f32[16,128], index: 3, kind: input, shape index: {}]   ;;  %s1338_s4 = inlined_call_operand.hbm [shape: f32[2,16,128], index: 4, kind: output, shape index: {}]  }
   0x1   :  { %11 = vsyncpa [#allocation4 + $0x1], 0 }
   0x2   :  { %12 = vsyncpa [#allocation7], 0 }
   0x3   :  { %13 = vsyncpa [#allocation10], 0 }
   0x4   :  { %14 = vsyncpa [#allocation5], 0 }
   0x5   :  { %16 = vsyncpa [#allocation5 + $0x1], 0  ;;  %s1040_s15 = smov 0   ;;  %s1042_s16 = smov 0  }
   0x6   :  { %s1044_s17 = smov 0   ;;  %s1046_s18 = smov 0  }
   0x7 LB: > { %s1061_s19 = sadd.s32 4294967295, %s1000_s18   ;;  %s658_s20 = sadd.s32 4294967294, %s1000_s18   ;;  %s1000_s18 = sphi %s1046_s18, %s1361_s18   ;;  %s996_s17 = sphi %s1044_s17, %s1360_s17   ;;  %s992_s16 = sphi %s1042_s16, %s1359_s16   ;;  %s988_s15 = sphi %s1040_s15, %s1358_s15  }
   0x8   : > { %p42_p0 = scmp.ne.s32.totalorder %s992_s16, %s988_s15  ;;  %p1339_p1 = scmp.eq.s32.totalorder %s1061_s19, 0 }
   0x9   : > { %p135_p3 = scmp.eq.s32.totalorder %s658_s20, 1  ;;  %p659_p5 = scmp.ge.s32.totalorder %s1000_s18, 1 }
   0xa   : > { %p1070_p4 = por %p1339_p1, %p42_p0  ;;  %p142_p7 = scmp.lt.s32.totalorder %s1000_s18, 3 }
   0xb   : > { %p1075_p6 = por %p135_p3, %p42_p0  ;;  %s1002_s24 = smov [#allocation6]  }
   0xc   : > { %s1342_s21 = scalar_select %p1070_p4, 1, 0 }
   0xd   : > { %s1343_s22 = scalar_select %p1075_p6, 1, 0 }
   0xe   : > { %p1080_p8 = pnand %p659_p5, %p142_p7  ;;  %s154_s25 = sshll.u32 %s1002_s24, 4  ;;  %s1084_s25 = int_to_ptr.vmem [resolvable:$true] %s154_s25 }
   0xf   : > { %s1003_s27 = smov [#allocation8]   ;;  %s1004_s29 = smov [#allocation9]  }
  0x10   : > { %s1344_s23 = scalar_select %p1080_p8, 1, 0 }
  0x11   : > { %p743_p9 = pneg %p1080_p8  ;;  %s167_s28 = sshll.u32 %s1003_s27, 4  ;;  %s1095_s28 = int_to_ptr.vmem [resolvable:$true] %s167_s28 }
  0x12   : > { %s1097_s30 = sshll.u32 %s1004_s29, 4  ;;  %s812_s7 = scalar_lea.hbm %s1335_s1, 2304  ;;  %s181_s30 = int_to_ptr.vmem [resolvable:$true] %s1097_s30 }
  0x13   : > { %p1091_p11 = pnand %p743_p9, %p1339_p1  ;;  %p813_p12 = scmp.ne.s32.totalorder %s1335_s1, %s812_s7 }
  0x14   : > { %p819_p5 = scmp.lt.u32.totalorder %s812_s7, %s1335_s1 }
  0x15   : > { %p1107_p13 = pneg %p1091_p11 }
  0x17   : > { %p815_p0 = pnand %p1107_p13, %p813_p12 }
  0x19   : > { %p816_p3 = pneg %p815_p0 }
  0x1b   : > { %p821_p7 = pnand %p819_p5, %p816_p3 }
  0x1d   : > { %824 = shalt.err (!%p821_p7)
}
  0x1e   : > { %s825_s13 = scalar_lea.vmem %s1084_s25, 2304  ;;  %p833_p2 = scmp.lt.s32.totalorder %s1084_s25, %s1084_s25 }
  0x1f   : > { %p826_p9 = scmp.ne.s32.totalorder %s1084_s25, %s825_s13  ;;  %p834_p6 = scmp.lt.s32.totalorder %s825_s13, %s825_s13 }
  0x21   : > { %p828_p10 = pnand %p826_p9, %p1107_p13  ;;  %p835_p12 = por %p834_p6, %p833_p2 }
  0x23   : > { %p829_p1 = pneg %p828_p10 }
  0x25   : > { %p836_p0 = pnand %p835_p12, %p829_p1 }
  0x27   : > { %839 = shalt.err (!%p836_p0)
}
  0x28   : > { %s1005_s14 = smov 128   ;;  %s1006_s20 = smov 8  }
  0x29   : > { %746 = dma.hbm_to_vmem [thread:$0]  (!%p1091_p11), %s1335_s1, 2304, %s1084_s25, [#allocation7], %s1005_s14, %s1005_s14, %s1006_s20  }
  0x2a   : > { %s840_s6 = scalar_lea.hbm %s1336_s2, 1024 }
  0x2b   : > { %p841_p1 = scmp.ne.s32.totalorder %s1336_s2, %s840_s6  ;;  %p847_p10 = scmp.lt.u32.totalorder %s840_s6, %s1336_s2 }
  0x2d   : > { %p843_p2 = pnand %p841_p1, %p1107_p13 }
  0x2f   : > { %p844_p6 = pneg %p843_p2 }
  0x31   : > { %p849_p3 = pnand %p847_p10, %p844_p6 }
  0x33   : > { %852 = shalt.err (!%p849_p3)
}
  0x34   : > { %s853_s25 = scalar_lea.vmem %s1095_s28, 1024  ;;  %p861_p12 = scmp.lt.s32.totalorder %s1095_s28, %s1095_s28 }
  0x35   : > { %p854_p5 = scmp.ne.s32.totalorder %s1095_s28, %s853_s25  ;;  %p862_p0 = scmp.lt.s32.totalorder %s853_s25, %s853_s25 }
  0x37   : > { %p856_p7 = pnand %p854_p5, %p1107_p13  ;;  %p863_p1 = por %p862_p0, %p861_p12 }
  0x39   : > { %p857_p9 = pneg %p856_p7 }
  0x3b   : > { %p864_p2 = pnand %p863_p1, %p857_p9 }
  0x3d   : > { %867 = shalt.err (!%p864_p2)
}
  0x3e   : > { %749 = dma.hbm_to_vmem [thread:$0]  (!%p1091_p11), %s1336_s2, 1024, %s1095_s28, [#allocation7], %s1005_s14, %s1005_s14, %s1006_s20  }
  0x3f   : > { %s868_s29 = scalar_lea.hbm %s1337_s3, 256 }
  0x40   : > { %p869_p6 = scmp.ne.s32.totalorder %s1337_s3, %s868_s29  ;;  %p875_p5 = scmp.lt.u32.totalorder %s868_s29, %s1337_s3 }
  0x42   : > { %p871_p10 = pnand %p869_p6, %p1107_p13 }
  0x44   : > { %p872_p3 = pneg %p871_p10 }
  0x46   : > { %p877_p7 = pnand %p875_p5, %p872_p3 }
  0x48   : > { %880 = shalt.err (!%p877_p7)
}
  0x49   : > { %s881_s9 = scalar_lea.vmem %s181_s30, 256  ;;  %p889_p1 = scmp.lt.s32.totalorder %s181_s30, %s181_s30 }
  0x4a   : > { %p882_p9 = scmp.ne.s32.totalorder %s181_s30, %s881_s9  ;;  %p890_p2 = scmp.lt.s32.totalorder %s881_s9, %s881_s9 }
  0x4c   : > { %p884_p12 = pnand %p882_p9, %p1107_p13  ;;  %p891_p4 = por %p890_p2, %p889_p1 }
  0x4e   : > { %p885_p0 = pneg %p884_p12 }
  0x50   : > { %p892_p8 = pnand %p891_p4, %p885_p0 }
  0x52   : > { %895 = shalt.err (!%p892_p8)
}
  0x53   : > { %752 = dma.hbm_to_vmem [thread:$0]  (!%p1091_p11), %s1337_s3, 256, %s181_s30, [#allocation10], %s1005_s14, %s1005_s14, %s1006_s20  }
  0x54   : > { %s1180_s10 = sadd.s32 1, %s1000_s18   ;;  %s29_s25 = sadd.s32 1, %s996_s17 }
  0x55   : > { %s26_s26 = ssub.s32 %s1000_s18, %s1180_s10  ;;  %p36_p8 = scmp.ne.s32.totalorder %s996_s17, %s992_s16 }
  0x56   : > { %p27_p4 = scmp.eq.s32.totalorder %s26_s26, 0  ;;  %p37_p13 = scmp.eq.s32.totalorder %s1000_s18, 0 }
  0x57   : > { %p764_p6 = scmp.lt.s32.totalorder %s1000_s18, 2  ;;  %p1347_p3 = scmp.eq.s32.totalorder %s1061_s19, 1 }
  0x58   : > { %s1190_s12 = scalar_select %p27_p4, %s996_s17, %s29_s25  }
  0x59   : > { %p38_p10 = por %p37_p13, %p36_p8  ;;  %p1194_p5 = por %p1347_p3, %p36_p8 }
  0x5a   : > { %s194_s24 = sand.u32 1, %s996_s17   ;;  %s680_s27 = sshll.u32 %s1000_s18, 8 }
  0x5b   : > { %s664_s30 = sshll.u32 %s194_s24, 4  ;;  %s1203_s6 = scalar_lea.hbm %s1334_s0, %s680_s27 }
  0x5c   : > { %s198_s7 = scalar_lea.vmem [#allocation3], %s664_s30  ;;  %p1205_p11 = pnand %p764_p6, %p38_p10 }
  0x5d   : > { %s205_s8 = sshll.u32 %s198_s7, 4  ;;  %s1211_s28 = scalar_lea.sflag [#allocation4], %s194_s24  ;;  %s1209_s8 = int_to_ptr.vmem [resolvable:$true] %s205_s8 }
  0x5e   : > { %s896_s11 = scalar_lea.hbm %s1203_s6, 256  ;;  %p898_p9 = pneg %p1205_p11 }
  0x5f   : > { %p897_p7 = scmp.ne.s32.totalorder %s1203_s6, %s896_s11  ;;  %s901_s27 = scalar_lea.hbm %s1334_s0, 512 }
  0x60   : > { %p902_p1 = scmp.lt.u32.totalorder %s1203_s6, %s1334_s0  ;;  %p903_p2 = scmp.lt.u32.totalorder %s901_s27, %s896_s11 }
  0x61   : > { %p899_p12 = pnand %p898_p9, %p897_p7  ;;  %p905_p8 = scmp.lt.u32.totalorder %s896_s11, %s1203_s6 }
  0x62   : > { %p904_p4 = por %p903_p2, %p902_p1 }
  0x63   : > { %p900_p0 = pneg %p899_p12 }
  0x64   : > { %p906_p13 = por %p905_p8, %p904_p4 }
  0x66   : > { %p907_p6 = pnand %p906_p13, %p900_p0 }
  0x68   : > { %910 = shalt.err (!%p907_p6)
}
  0x69   : > { %s911_s24 = scalar_lea.vmem %s1209_s8, 256  ;;  %s1007_s5 = smov [#allocation3]  }
  0x6a   : > { %p912_p10 = scmp.ne.s32.totalorder %s1209_s8, %s911_s24  ;;  %s916_s7 = sshll.u32 %s1007_s5, 4  ;;  %s917_s7 = int_to_ptr.vmem [resolvable:$false] %s916_s7 }
  0x6b   : > { %s918_s26 = scalar_lea.vmem %s917_s7, 512  ;;  %p919_p12 = scmp.lt.s32.totalorder %s1209_s8, %s917_s7 }
  0x6c   : > { %p914_p3 = pnand %p912_p10, %p898_p9  ;;  %p920_p1 = scmp.lt.s32.totalorder %s918_s26, %s911_s24 }
  0x6e   : > { %p915_p7 = pneg %p914_p3  ;;  %p921_p2 = por %p920_p1, %p919_p12 }
  0x70   : > { %p922_p4 = pnand %p921_p2, %p915_p7 }
  0x72   : > { %925 = shalt.err (!%p922_p4)
}
  0x73   : > { %756 = dma.hbm_to_vmem [thread:$0]  (!%p1205_p11), %s1203_s6, 256, %s1209_s8, %s1211_s28, %s1005_s14, %s1005_s14, %s1006_s20  }
  0x74   : > { %p1350_p9 = scmp.ne.s32.totalorder %s1344_s23, 0 }
  0x75   : > { %s1245_s11 = sand.u32 (!%p1350_p9), 1, %s992_s16   ;;  %p1351_p0 = scmp.ne.s32.totalorder (!%p1350_p9), %s1342_s21, 0 }
  0x76   : > { %217 = sbr.rel (%p1350_p9) target bundleno = 633 (0x279), region = 36  ;;  %s668_s25 = sshll.u32 (!%p1350_p9), %s1245_s11, 4 }
  0x77   : > { %s220_s27 = scalar_lea.sflag (!%p1350_p9), [#allocation4], %s1245_s11  ;;  %s223_s9 = scalar_lea.vmem (!%p1350_p9), [#allocation3], %s668_s25 }
  0x7d   : > { %971 = dma.done.wait (%p1351_p0), %s220_s27, 256  }
  0x7e   : > { %973 = vsyncadd (%p1351_p0), %s220_s27, 4294967040  ;;  %p1352_p11 = scmp.eq.s32.totalorder %s1061_s19, 0 }
  0x80   : > { %975 = dma.done.wait (%p1352_p11), [#allocation7], 3328   ;;  %p1353_p8 = pmov %p1352_p11 }
  0x82   : > { %977 = vsyncadd (%p1353_p8), [#allocation7], 4294963968  ;;  %p1354_p13 = pmov %p1353_p8 }
  0x83   : > { %p1355_p6 = pmov %p1353_p8 }
  0x84   : > { %979 = dma.done.wait (%p1354_p13), [#allocation10], 256  }
  0x85   : > { %981 = vsyncadd (%p1355_p6), [#allocation10], 4294967040  ;;  %vm260_vm0 = vcmask 581632   ;;  %vm263_vm1 = vcmask 31744   ;;  %vm268_vm2 = vcmask 589344   ;;  %v1008_v0 = vmov 0.0  }
  0x86   : > { %261 = vst.msk [vmem:[#allocation2] sm:$0x1] %vm260_vm0, %v1008_v0  ;;  %262 = vst.msk [vmem:[#allocation2 + $0x11] sm:$0x1] %vm260_vm0, %v1008_v0  ;;  %vm266_vm3 = vcmask 25600   ;;  %vm271_vm4 = vcmask 583200  }
  0x87   : > { %264 = vst.msk [vmem:[#allocation2] sm:$0xff] %vm263_vm1, %v1008_v0  ;;  %265 = vst.msk [vmem:[#allocation2 + $0x8] sm:$0xff] %vm263_vm1, %v1008_v0  ;;  %v293_v1 = vld [vmem:[#allocation6 + $0x10] sm:$0xff]  ;;  %s1009_s21 = smov 4   ;;  %v294_v3 = vld [vmem:[#allocation6 + $0x18] sm:$0xff]  ;;  %s1010_s23 = smov 8  }
  0x88   : > { %267 = vst.msk [vmem:[#allocation2 + $0x10] sm:$0x3] %vm266_vm3, %v1008_v0  ;;  %v273_v2 = vld [vmem:[%s223_s9] sm:$0xff]  ;;  %297 = vrot.lane.b32.xlu1 %v293_v1, %s1009_s21  ;;  %v274_v4 = vld [vmem:[%s223_s9 + $0x8] sm:$0xff]  ;;  %vm283_vm5 = vcmask 556064   ;;  %s1011_s14 = smov 124  }
  0x89   : > { %269 = vst.msk [vmem:[#allocation2] sm:$0xff] %vm268_vm2, %v1008_v0  ;;  %270 = vst.msk [vmem:[#allocation2 + $0x8] sm:$0xff] %vm268_vm2, %v1008_v0  ;;  %277 = vrot.lane.b32.xlu0 %v273_v2, %s1009_s21  ;;  %v317_v5 = vld [vmem:[#allocation6 + $0x28] sm:$0xff]  ;;  %v316_v6 = vld [vmem:[#allocation6 + $0x20] sm:$0xff]  ;;  %s1012_s20 = smov 120   ;;  %vm458_vm6 = vcmask 523264  }
  0x8a   : > { %272 = vst.msk [vmem:[#allocation2 + $0x10] sm:$0x3] %vm271_vm4, %v1008_v0  ;;  %v349_v7 = vld [vmem:[#allocation6 + $0x48] sm:$0xff]  ;;  %v348_v8 = vld [vmem:[#allocation6 + $0x40] sm:$0xff]  ;;  %v372_v9 = vld [vmem:[#allocation6 + $0x58] sm:$0xff]  ;;  %s259_s6 = scalar_lea.vmem [#allocation11], %s668_s25 }
  0x8b   : > { %v371_v10 = vld [vmem:[#allocation6 + $0x50] sm:$0xff]  ;;  %v404_v11 = vld [vmem:[#allocation6 + $0x78] sm:$0xff]  ;;  %v427_v13 = vld [vmem:[#allocation6 + $0x88] sm:$0xff]  ;;  %s556_s8 = sshll.u32 %s259_s6, 4  ;;  %s681_s28 = sshll.u32 %s1061_s19, 8  ;;  %s1284_s8 = int_to_ptr.vmem [resolvable:$true] %s556_s8 }
  0x8c   : > { %299 = vrot.lane.b32.xlu1 %v294_v3, %s1009_s21  ;;  %v403_v12 = vld [vmem:[#allocation6 + $0x70] sm:$0xff]  ;;  %v426_v14 = vld [vmem:[#allocation6 + $0x80] sm:$0xff]  ;;  %v449_v20 = vld [vmem:[#allocation8 + $0x8] sm:$0xff]  ;;  %s1289_s24 = scalar_lea.hbm %s1338_s4, %s681_s28  ;;  %s543_s5 = scalar_lea.sflag [#allocation5], %s1245_s11 }
  0x8d   : > { %279 = vrot.lane.b32.xlu0 %v274_v4, %s1009_s21  ;;  %v448_v19 = vld [vmem:[#allocation8] sm:$0xff]  ;;  %v450_v26 = vld [vmem:[#allocation8 + $0x10] sm:$0xff]  ;;  %v451_v27 = vld [vmem:[#allocation8 + $0x18] sm:$0xff]  ;;  %s926_s7 = scalar_lea.vmem %s1284_s8, 256  ;;  %s1013_s19 = smov [#allocation11]  }
  0x8e   : > { %v711_v21 = vpack.c.bf16 %v449_v20, %v448_v19  ;;  %v715_v28 = vpack.c.bf16 %v451_v27, %v450_v26  ;;  %v452_v34 = vld [vmem:[#allocation8 + $0x20] sm:$0xff]  ;;  %v453_v35 = vld [vmem:[#allocation8 + $0x28] sm:$0xff]  ;;  %v454_v43 = vld [vmem:[#allocation8 + $0x30] sm:$0xff]  ;;  %p927_p10 = scmp.ne.s32.totalorder %s1284_s8, %s926_s7  ;;  %s930_s26 = sshll.u32 %s1013_s19, 4  ;;  %s931_s26 = int_to_ptr.vmem [resolvable:$false] %s930_s26 }
  0x8f   : > { %v719_v36 = vpack.c.bf16 %v453_v35, %v452_v34  ;;  %v455_v44 = vld [vmem:[#allocation8 + $0x38] sm:$0xff]  ;;  %v288_v59 = vld [vmem:[#allocation6] sm:$0xff]  ;;  %v341_v63 = vld [vmem:[#allocation6 + $0x30] sm:$0xff]  ;;  %s932_s25 = scalar_lea.vmem %s931_s26, 512  ;;  %p933_p12 = scmp.lt.s32.totalorder %s1284_s8, %s931_s26 }
  0x90   : > { %322 = vrot.lane.b32.xlu1 %v317_v5, %s1010_s23  ;;  %712 = vmatprep.subr.bf16.mxu0 %v711_v21  ;;  %v723_v45 = vpack.c.bf16 %v455_v44, %v454_v43  ;;  %v289_v62 = vld [vmem:[#allocation6 + $0x8] sm:$0xff]  ;;  %v457_v35 = vld [vmem:[#allocation9 + $0x8] sm:$0xff]  ;;  %p928_p3 = pnand %p927_p10, %p1194_p5  ;;  %p934_p1 = scmp.lt.s32.totalorder %s932_s25, %s926_s7 }
  0x91   : > { %320 = vrot.lane.b32.xlu0 %v316_v6, %s1010_s23  ;;  %714 = vmatpush3.bf16.msra.mxu0 %v711_v21  ;;  %v342_v6 = vld [vmem:[#allocation6 + $0x38] sm:$0xff]  ;;  %v397_v20 = vld [vmem:[#allocation6 + $0x68] sm:$0xff] }
  0x92   : > { %716 = vmatprep.subr.bf16.mxu0 %v715_v28  ;;  %p929_p7 = pneg %p928_p3  ;;  %p935_p2 = por %p934_p1, %p933_p12 }
  0x94   : > { %354 = vrot.lane.b32.xlu1 %v349_v7, %s1009_s21  ;;  %p936_p4 = pnand %p935_p2, %p929_p7 }
  0x95   : > { %352 = vrot.lane.b32.xlu0 %v348_v8, %s1009_s21  ;;  %718 = vmatpush3.bf16.msra.mxu0 %v715_v28 }
  0x96   : > { %720 = vmatprep.subr.bf16.mxu0 %v719_v36 }
  0x98   : > { %377 = vrot.lane.b32.xlu1 %v372_v9, %s1010_s23 }
  0x99   : > { %375 = vrot.lane.b32.xlu0 %v371_v10, %s1010_s23  ;;  %722 = vmatpush3.bf16.msra.mxu0 %v719_v36  ;;  %v456_v36 = vld [vmem:[#allocation9] sm:$0xff] }
  0x9a   : > { %724 = vmatprep.subr.bf16.mxu0 %v723_v45 }
  0x9c   : > { %409 = vrot.lane.b32.xlu1 %v404_v11, %s1009_s21 }
  0x9d   : > { %407 = vrot.lane.b32.xlu0 %v403_v12, %s1009_s21  ;;  %726 = vmatpush3.bf16.msra.mxu0 %v723_v45 }
  0xa0   : > { %432 = vrot.lane.b32.xlu1 %v427_v13, %s1010_s23  ;;  %v396_v13 = vld [vmem:[#allocation6 + $0x60] sm:$0xff] }
  0xa1   : > { %430 = vrot.lane.b32.xlu0 %v426_v14, %s1010_s23 }
  0xfa   : > { %v298_v15 = vpop.permute.xlu1 %297 }
  0xfb   : > { %v278_v16 = vpop.permute.xlu0 %277 }
  0xfc   : > { %284 = vst.msk [vmem:[#allocation2 + $0x1] sm:$0xff] %vm283_vm5, %v278_v16 }
  0xfe   : > { %v300_v17 = vpop.permute.xlu1 %299 }
  0xff   : > { %v280_v18 = vpop.permute.xlu0 %279 }
 0x100   : > { %285 = vst.msk [vmem:[#allocation2 + $0x9] sm:$0xff] %vm283_vm5, %v280_v18 }
 0x102   : > { %v323_v22 = vpop.permute.xlu1 %322 }
 0x103   : > { %v321_v23 = vpop.permute.xlu0 %320  ;;  %v286_v24 = vld [vmem:[#allocation2] sm:$0xff] }
 0x104   : > { %v303_v25 = vmul.f32 %v298_v15, %v286_v24  ;;  %v326_v32 = vmul.f32 %v321_v23, %v286_v24  ;;  %v338_v37 = vld [vmem:[#allocation2 + $0x1] sm:$0xff]  ;;  %v290_v61 = vmul.f32 %v288_v59, %v286_v24 }
 0x105   : > { %v343_v5 = vmul.f32 %v341_v63, %v338_v37 }
 0x106   : > { %307 = vrot.lane.b32.xlu0 %v303_v25, %s1011_s14  ;;  %v355_v30 = vpop.permute.xlu1 %354 }
 0x107   : > { %v287_v29 = vld [vmem:[#allocation2 + $0x8] sm:$0xff]  ;;  %v353_v31 = vpop.permute.xlu0 %352 }
 0x108   : > { %v304_v33 = vmul.f32 %v300_v17, %v287_v29  ;;  %v327_v39 = vmul.f32 %v323_v22, %v287_v29  ;;  %v358_v40 = vmul.f32 %v353_v31, %v338_v37  ;;  %v339_v41 = vld [vmem:[#allocation2 + $0x9] sm:$0xff]  ;;  %v291_v3 = vmul.f32 %v289_v62, %v287_v29 }
 0x109   : > { %v359_v47 = vmul.f32 %v355_v30, %v339_v41  ;;  %v393_v50 = vld [vmem:[#allocation2 + $0x2] sm:$0xff]  ;;  %v394_v54 = vld [vmem:[#allocation2 + $0xa] sm:$0xff]  ;;  %v344_v12 = vmul.f32 %v342_v6, %v339_v41 }
 0x10a   : > { %309 = vrot.lane.b32.xlu1 %v304_v33, %s1011_s14  ;;  %330 = vrot.lane.b32.xlu0 %v326_v32, %s1012_s20  ;;  %v378_v42 = vpop.permute.xlu1 %377  ;;  %v398_v19 = vmul.f32 %v396_v13, %v393_v50  ;;  %v399_v26 = vmul.f32 %v397_v20, %v394_v54 }
 0x10b   : > { %v376_v38 = vpop.permute.xlu0 %375  ;;  %v382_v51 = vmul.f32 %v378_v42, %v339_v41 }
 0x10c   : > { %v381_v48 = vmul.f32 %v376_v38, %v338_v37 }
 0x10e   : > { %332 = vrot.lane.b32.xlu1 %v327_v39, %s1012_s20  ;;  %362 = vrot.lane.b32.xlu0 %v358_v40, %s1011_s14  ;;  %v410_v49 = vpop.permute.xlu1 %409 }
 0x10f   : > { %v408_v46 = vpop.permute.xlu0 %407  ;;  %v414_v55 = vmul.f32 %v410_v49, %v394_v54 }
 0x110   : > { %v413_v52 = vmul.f32 %v408_v46, %v393_v50 }
 0x112   : > { %364 = vrot.lane.b32.xlu1 %v359_v47, %s1011_s14  ;;  %385 = vrot.lane.b32.xlu0 %v381_v48, %s1012_s20  ;;  %v433_v57 = vpop.permute.xlu1 %432 }
 0x113   : > { %v431_v53 = vpop.permute.xlu0 %430  ;;  %v437_v58 = vmul.f32 %v433_v57, %v394_v54 }
 0x114   : > { %v436_v56 = vmul.f32 %v431_v53, %v393_v50 }
 0x116   : > { %387 = vrot.lane.b32.xlu1 %v382_v51, %s1012_s20  ;;  %417 = vrot.lane.b32.xlu0 %v413_v52, %s1011_s14 }
 0x11a   : > { %419 = vrot.lane.b32.xlu1 %v414_v55, %s1011_s14  ;;  %440 = vrot.lane.b32.xlu0 %v436_v56, %s1012_s20 }
 0x11e   : > { %442 = vrot.lane.b32.xlu1 %v437_v58, %s1012_s20 }
 0x178   : > { %v308_v60 = vpop.permute.xlu0 %307 }
 0x179   : > { %v313_v0 = vadd.f32 %v308_v60, %v290_v61 }
 0x17c   : > { %v310_v1 = vpop.permute.xlu1 %309  ;;  %v331_v2 = vpop.permute.xlu0 %330 }
 0x17d   : > { %v336_v4 = vadd.f32 %v331_v2, %v313_v0  ;;  %v314_v7 = vadd.f32 %v310_v1, %v291_v3 }
 0x17f   : > { %v345_v8 = vadd.f32 %v343_v5, %v336_v4 }
 0x180   : > { %v333_v9 = vpop.permute.xlu1 %332  ;;  %v363_v10 = vpop.permute.xlu0 %362 }
 0x181   : > { %v337_v11 = vadd.f32 %v333_v9, %v314_v7  ;;  %v368_v14 = vadd.f32 %v363_v10, %v345_v8 }
 0x183   : > { %v346_v15 = vadd.f32 %v344_v12, %v337_v11 }
 0x184   : > { %v365_v16 = vpop.permute.xlu1 %364  ;;  %v386_v17 = vpop.permute.xlu0 %385 }
 0x185   : > { %v391_v18 = vadd.f32 %v386_v17, %v368_v14  ;;  %v369_v21 = vadd.f32 %v365_v16, %v346_v15 }
 0x187   : > { %v400_v22 = vadd.f32 %v398_v19, %v391_v18 }
 0x188   : > { %v388_v23 = vpop.permute.xlu1 %387  ;;  %v418_v24 = vpop.permute.xlu0 %417 }
 0x189   : > { %v392_v25 = vadd.f32 %v388_v23, %v369_v21  ;;  %v423_v27 = vadd.f32 %v418_v24, %v400_v22 }
 0x18b   : > { %v401_v28 = vadd.f32 %v399_v26, %v392_v25 }
 0x18c   : > { %v420_v29 = vpop.permute.xlu1 %419  ;;  %v441_v30 = vpop.permute.xlu0 %440 }
 0x18d   : > { %v446_v31 = vadd.f32 %v441_v30, %v423_v27  ;;  %v424_v32 = vadd.f32 %v420_v29, %v401_v28 }
 0x18f   : > { %708 = vmatprep.mubr.msk.f32.mxu0 %vm458_vm6, %v446_v31 }
 0x190   : > { %v443_v33 = vpop.permute.xlu1 %442 }
 0x191   : > { %v447_v34 = vadd.f32 %v443_v33, %v424_v32 }
 0x193   : > { %709 = vmatmul.mubr.msk.f32.vlgmr.msra.gmra.mrb[0].mxu0 %vm458_vm6, %v447_v34 }
 0x266   : > { %v710_v37 = vpop.f32.mrb[0].mxu0 }
 0x267   : > { %v537_v38 = vadd.f32 %v710_v37, %v457_v35  ;;  %v531_v39 = vpop.f32.mrb[1].mxu0 }
 0x268   : > { %v532_v40 = vadd.f32 %v531_v39, %v456_v36 }
 0x269   : > { %541 = vst [vmem:[%s259_s6 + $0x8] sm:$0xff] %v537_v38 }
 0x26a   : > { %540 = vst [vmem:[%s259_s6] sm:$0xff] %v532_v40 }
 0x26b   : > { %939 = shalt.err (!%p936_p4)
}
 0x26c   : > { %s940_s27 = scalar_lea.hbm %s1289_s24, 256  ;;  %s944_s14 = scalar_lea.hbm %s1338_s4, 512 }
 0x26d   : > { %p941_p9 = scmp.ne.s32.totalorder %s1289_s24, %s940_s27  ;;  %p945_p8 = scmp.lt.u32.totalorder %s1289_s24, %s1338_s4 }
 0x26e   : > { %p946_p13 = scmp.lt.u32.totalorder %s944_s14, %s940_s27  ;;  %p948_p10 = scmp.lt.u32.totalorder %s940_s27, %s1289_s24 }
 0x26f   : > { %p942_p0 = pnand %p941_p9, %p1194_p5 }
 0x270   : > { %p947_p6 = por %p946_p13, %p945_p8 }
 0x271   : > { %p943_p11 = pneg %p942_p0 }
 0x272   : > { %p949_p3 = por %p948_p10, %p947_p6 }
 0x274   : > { %p950_p7 = pnand %p949_p3, %p943_p11 }
 0x276   : > { %953 = shalt.err (!%p950_p7)
}
 0x277   : > { %s1014_s28 = smov 128  }
 0x278   : > { %741 = dma.vmem_to_hbm [thread:$0]  (%p1194_p5), %s1284_s8, 256, %s1289_s24, %s543_s5, %s1014_s28, %s1014_s28, %s1010_s23  }
 0x279 PF: > { %s571_s30 = sand.u32 1, %s988_s15   ;;  %p1356_p12 = scmp.ne.s32.totalorder %s1343_s22, 0 }
 0x27a   : > { %p1357_p1 = scmp.ge.s32.totalorder %s1000_s18, 2  ;;  %s572_s29 = scalar_lea.sflag [#allocation5], %s571_s30 }
 0x27c   : > { %p758_p2 = pnand %p1357_p1, %p1356_p12 }
 0x27e   : > { %983 = dma.done.wait (!%p758_p2), %s572_s29, 256  }
 0x27f   : > { %985 = vsyncadd (!%p758_p2), %s572_s29, 4294967040  ;;  %p19_p4 = scmp.ge.s32.totalorder %s1180_s10, 4   ;;  %s1358_s15 = smov %s992_s16 }
 0x280   : > { %s1359_s16 = smov %s996_s17  ;;  %s1360_s17 = smov %s1190_s12 }
 0x281   : > { %s1361_s18 = smov %s1180_s10  ;;  %21 = sbr.rel (!%p19_p4) target bundleno = 7 (0x7), region = 101 }
 0x288   :  { %577 = vsyncpa [#allocation4], 1 }
 0x289   :  { %579 = vsyncpa [#allocation4 + $0x1], 1 }
 0x28a   :  { %580 = vsyncpa [#allocation7], 1 }
 0x28b   :  { %581 = vsyncpa [#allocation10], 1 }
 0x28c   :  { %582 = vsyncpa [#allocation5], 1 }
 0x28d   :  { %584 = vsyncpa [#allocation5 + $0x1], 1 }

</bundles_post_ra>
